<compile_context>
chip_gen: v5e
topology: v5e:2x2
jax: 0.10.0
libtpu: 0.0.40
codegen_flags: <defaults>
</compile_context>

<pallas_src>
import jax
import jax.numpy as jnp
from jax.experimental import pallas as pl
from jax.experimental.pallas import tpu as pltpu


def _surface_render_kernel(inv_scale_ref,          # SMEM (1,) f32
                           samples_ref,            # (TS, 9+Csem, TR) bf16/f32
                           origins_ref,            # (3, TR) f32
                           nears_ref,              # (1, TR) f32
                           fars_ref,               # (1, TR) f32
                           out_ref,                # (12+Csem, TR) f32
                           wsum_ref,               # scratch (1, TR) f32
                           csum_ref):              # scratch (8+Csem, TR) f32
    k = pl.program_id(1)

    @pl.when(k == 0)
    def _():
        wsum_ref[...] = jnp.zeros_like(wsum_ref)
        csum_ref[...] = jnp.zeros_like(csum_ref)

    # Accumulate this sample tile in f32 (pure VPU adds over the leading axis;
    # no cross-lane / XLU work).  Channel 0 of the slab is the weight.
    x = samples_ref[...].astype(jnp.float32)        # (TS, 9+Csem, TR)
    w = x[:, 0:1, :]                                # (TS, 1, TR)
    wsum_ref[...] += jnp.sum(w, axis=0)             # (1, TR)
    csum_ref[...] += jnp.sum(w * x[:, 1:, :], axis=0)   # (8+Csem, TR)

    @pl.when(k == pl.num_programs(1) - 1)
    def _():
        inv_scale = inv_scale_ref[0]
        sums = csum_ref[...]                        # rows: starts, ends, rgb3, nrm3, sem
        w_sum = wsum_ref[...]
        csem = sums.shape[0] - 8
        c_render = 6 + csem

        # DepthRenderer: expected depth over sample midpoints.
        #   sum_s w*0.5*(starts+ends) == 0.5*(sum_ws + sum_we)
        # TODO(synk): some DepthRenderer variants clip depth to [steps.min, steps.max].
        depth = 0.5 * (sums[0:1, :] + sums[1:2, :]) / (w_sum + 1e-10)

        # RGB / normal / semantic weighted sums are contiguous packed channels.
        out_ref[0:c_render, :] = sums[2:2 + c_render, :]
        out_ref[c_render:c_render + 1, :] = depth

        # ray_bundle scaling: origins /= scene_scale, nears/fars /= scene_scale
        out_ref[c_render + 1:c_render + 4, :] = origins_ref[...] * inv_scale
        out_ref[c_render + 4:c_render + 5, :] = nears_ref[...] * inv_scale
        out_ref[c_render + 5:c_render + 6, :] = fars_ref[...] * inv_scale


def _round_up(x, m):
    return -(-x // m) * m


def surface_model_forward(origins, nears, fars, scene_scale,
                          field_samples, sdf, gradients, sampled_points,
                          *, tile_rays=1024, tile_samples=None):
    """SurfaceModel.forward on pre-computed field/sampler outputs.

    origins: (3, R) f32   nears/fars: (1, R) f32   scene_scale: scalar
    field_samples: (S, 9+Csem, R) packed per-sample slab (bf16 or f32):
        [weights, starts, ends, rgb*3, normal*3, semantic*Csem]
    sdf / gradients / sampled_points: producer outputs passed through untouched.

    tile_rays:    rays per grid step (rounded to a multiple of 128).
    tile_samples: samples per reduction step; auto-chosen from a VMEM budget
                  when None.  Sample axis is padded with zero-weight samples.
    """
    S, c_in, R = field_samples.shape
    csem = c_in - 9
    c_out = 12 + csem
    fs_orig = field_samples          # unpadded, for pass-through slices

    # ---- ray tiling: lane-dense tiles (multiple of 128); pad the tail. ----
    tile_r = max(128, (int(tile_rays) // 128) * 128)
    tile_r = min(tile_r, _round_up(R, 128))
    r_pad = _round_up(R, tile_r)

    # ---- sample tiling: reduction axis; keep the f32-equivalent slab small.
    itemsize = jnp.dtype(field_samples.dtype).itemsize
    if tile_samples is None:
        budget_elems = (4 << 20) // (4 * c_in * tile_r)      # ~4 MiB f32-equiv
        tile_s = int(max(1, min(S, budget_elems)))
    else:
        tile_s = int(max(1, min(S, tile_samples)))
    s_pad = _round_up(S, tile_s)

    if s_pad != S or r_pad != R:
        field_samples = jnp.pad(
            field_samples, ((0, s_pad - S), (0, 0), (0, r_pad - R)))
    if r_pad != R:
        pad = r_pad - R
        origins = jnp.pad(origins, ((0, 0), (0, pad)))
        nears = jnp.pad(nears, ((0, 0), (0, pad)))
        fars = jnp.pad(fars, ((0, 0), (0, pad)))

    grid = (r_pad // tile_r, s_pad // tile_s)    # reduction (samples) axis last

    # Precompute 1/scene_scale once; pass as a 1-D SMEM scalar.
    inv_scale = jnp.reshape(1.0 / jnp.asarray(scene_scale, jnp.float32), (1,))

    # VMEM budget: double-buffered sample slab + f32 intermediates + outputs.
    slab = tile_s * c_in * tile_r
    per_step = (2 * slab * itemsize            # double-buffered input slab
                + 3 * slab * 4                 # f32 copy + product intermediate
                + 2 * (5 + c_out) * tile_r * 4 # per-ray in/out tiles
                + c_in * tile_r * 4)           # accumulator scratch
    vmem_limit = int(min(64 << 20, max(32 << 20, int(1.5 * per_step))))

    packed = pl.pallas_call(
        _surface_render_kernel,
        grid=grid,
        in_specs=[
            pl.BlockSpec(memory_space=pltpu.MemorySpace.SMEM),              # inv_scale
            pl.BlockSpec((tile_s, c_in, tile_r), lambda i, k: (k, 0, i)),   # samples
            pl.BlockSpec((3, tile_r), lambda i, k: (0, i)),                 # origins
            pl.BlockSpec((1, tile_r), lambda i, k: (0, i)),                 # nears
            pl.BlockSpec((1, tile_r), lambda i, k: (0, i)),                 # fars
        ],
        out_specs=pl.BlockSpec((c_out, tile_r), lambda i, k: (0, i)),
        out_shape=jax.ShapeDtypeStruct((c_out, r_pad), jnp.float32),
        scratch_shapes=[
            pltpu.VMEM((1, tile_r), jnp.float32),            # sum_s w
            pltpu.VMEM((c_in - 1, tile_r), jnp.float32),     # sum_s w*channel
        ],
        compiler_params=pltpu.CompilerParams(
            dimension_semantics=("parallel", "arbitrary"),
            vmem_limit_bytes=vmem_limit),
    )(inv_scale, field_samples, origins, nears, fars)

    packed = packed[:, :R]                          # drop ray-axis padding
    c_render = 6 + csem

    # get_outputs dict.  All per-ray tensors are rays-on-lanes (C, R); the
    # split of the packed slab is wrapper-side layout plumbing, not compute.
    outputs = {
        "rgb": packed[0:3],
        "normal": packed[3:6],
        "semantic": packed[6:6 + csem],
        "depth": packed[c_render:c_render + 1],
        "scaled_origins": packed[c_render + 1:c_render + 4],
        "scaled_nears": packed[c_render + 4:c_render + 5],
        "scaled_fars": packed[c_render + 5:c_render + 6],
        # pass-through fields (glue; no compute involved)
        "weights": fs_orig[:, 0:1, :],
        "z_vals": fs_orig[:, 1:2, :],               # ray_samples.frustums.starts
        "sdf": sdf,
        "gradients": gradients,
        "sampled_points": sampled_points,
    }
    return outputs


def _reference(origins, nears, fars, scene_scale, fs_f32, csem):
    inv = 1.0 / scene_scale
    w = fs_f32[:, 0:1]
    steps = 0.5 * (fs_f32[:, 1:2] + fs_f32[:, 2:3])
    w_sum = jnp.sum(w, axis=0)
    return {
        "rgb": jnp.sum(w * fs_f32[:, 3:6], axis=0),
        "normal": jnp.sum(w * fs_f32[:, 6:9], axis=0),
        "semantic": jnp.sum(w * fs_f32[:, 9:9 + csem], axis=0),
        "depth": jnp.sum(w * steps, axis=0) / (w_sum + 1e-10),
        "scaled_origins": origins * inv,
        "scaled_nears": nears * inv,
        "scaled_fars": fars * inv,
    }


if __name__ == "__main__":
    # Small shapes.  R is deliberately NOT a multiple of the ray tile and S is
    # NOT a multiple of the sample tile, exercising both padding paths and the
    # multi-step sample-axis accumulator (grid = (2, 3)).
    R, S, CSEM = 200, 16, 4
    key = jax.random.PRNGKey(0)
    ks = jax.random.split(key, 10)

    origins = jax.random.normal(ks[0], (3, R), jnp.float32)
    nears = jnp.abs(jax.random.normal(ks[1], (1, R), jnp.float32)) + 0.1
    fars = nears + 2.0
    scene_scale = jnp.float32(2.0)

    # Synthetic `sample_and_forward_field` outputs.  The producer emits one
    # packed, rays-on-lanes per-sample slab (bf16 to halve HBM traffic on the
    # dominant stream); this concatenate stands in for the producer's own
    # output layout and is NOT part of the kernel wrapper.
    logits = jax.random.normal(ks[2], (S, 1, R), jnp.float32)
    weights = jax.nn.softmax(logits, axis=0)
    starts = jnp.sort(jnp.abs(jax.random.normal(ks[3], (S, 1, R), jnp.float32)), axis=0)
    ends = starts + 0.05
    rgb = jax.nn.sigmoid(jax.random.normal(ks[4], (S, 3, R), jnp.float32))
    normal = jax.random.normal(ks[5], (S, 3, R), jnp.float32)
    semantic = jax.random.normal(ks[6], (S, CSEM, R), jnp.float32)
    field_samples = jnp.concatenate(
        [weights, starts, ends, rgb, normal, semantic], axis=1).astype(jnp.bfloat16)

    sdf = jax.random.normal(ks[7], (S, 1, R), jnp.float32)
    gradients = jax.random.normal(ks[8], (S, 3, R), jnp.float32)
    sampled_points = jax.random.normal(ks[9], (S, 3, R), jnp.float32)

    out = surface_model_forward(origins, nears, fars, scene_scale,
                                field_samples, sdf, gradients, sampled_points,
                                tile_rays=128, tile_samples=6)
    jax.block_until_ready(out)

    # Reference uses the same bf16-rounded per-sample values, accumulated in f32.
    fs_f32 = field_samples.astype(jnp.float32)
    ref = _reference(origins, nears, fars, scene_scale, fs_f32, CSEM)
    for k, v in ref.items():
        assert out[k].shape == v.shape, (k, out[k].shape, v.shape)
        assert jnp.allclose(out[k], v, atol=1e-4, rtol=1e-4), k

    print("KERNEL_OK")
</pallas_src>

<mosaic_0001>
module attributes {stable_mosaic.version = 11 : i64} {
  func.func @_surface_render_kernel(%arg0: i32, %arg1: i32, %arg2: memref<1xf32, #tpu.memory_space<smem>>, %arg3: memref<6x13x128xbf16, #tpu.memory_space<vmem>>, %arg4: memref<3x128xf32, #tpu.memory_space<vmem>>, %arg5: memref<1x128xf32, #tpu.memory_space<vmem>>, %arg6: memref<1x128xf32, #tpu.memory_space<vmem>>, %arg7: memref<16x128xf32, #tpu.memory_space<vmem>>, %arg8: memref<1x128xf32, #tpu.memory_space<vmem>>, %arg9: memref<12x128xf32, #tpu.memory_space<vmem>>) attributes {dimension_semantics = [#tpu.dimension_semantics<parallel>, #tpu.dimension_semantics<arbitrary>], iteration_bounds = array<i64: 2, 3>, scalar_prefetch = 0 : i64, scratch_operands = 2 : i64, tpu.core_type = #tpu.core_type<tc>, window_params = [{transform_indices = @transform_0, window_bounds = array<i64: 1>}, {transform_indices = @transform_1, window_bounds = array<i64: 6, 13, 128>}, {transform_indices = @transform_2, window_bounds = array<i64: 3, 128>}, {transform_indices = @transform_3, window_bounds = array<i64: 1, 128>}, {transform_indices = @transform_4, window_bounds = array<i64: 1, 128>}, {transform_indices = @transform_5, window_bounds = array<i64: 16, 128>}]} {
    %c0_i32 = arith.constant 0 : i32
    %0 = arith.cmpi eq, %arg1, %c0_i32 : i32
    %1 = arith.extui %0 : i1 to i32
    %c0_i32_0 = arith.constant 0 : i32
    %2 = arith.cmpi ne, %1, %c0_i32_0 : i32
    scf.if %2 {
      %cst_13 = arith.constant 0.000000e+00 : f32
      %20 = vector.broadcast %cst_13 : f32 to vector<1x128xf32>
      %c0_14 = arith.constant 0 : index
      %c0_15 = arith.constant 0 : index
      %21 = vector.load %arg8[%c0_14, %c0_15] : memref<1x128xf32, #tpu.memory_space<vmem>>, vector<1x128xf32>
      tpu.vector_store %arg8[%c0_14, %c0_15], %20 {strides = array<i32>} : memref<1x128xf32, #tpu.memory_space<vmem>>, vector<1x128xf32>,
      %cst_16 = arith.constant 0.000000e+00 : f32
      %22 = vector.broadcast %cst_16 : f32 to vector<12x128xf32>
      %c0_17 = arith.constant 0 : index
      %c0_18 = arith.constant 0 : index
      %23 = vector.load %arg9[%c0_17, %c0_18] : memref<12x128xf32, #tpu.memory_space<vmem>>, vector<12x128xf32>
      tpu.vector_store %arg9[%c0_17, %c0_18], %22 {strides = array<i32>} : memref<12x128xf32, #tpu.memory_space<vmem>>, vector<12x128xf32>,
    } else {
    }
    %c0 = arith.constant 0 : index
    %c0_1 = arith.constant 0 : index
    %c0_2 = arith.constant 0 : index
    %3 = vector.load %arg3[%c0, %c0_1, %c0_2] : memref<6x13x128xbf16, #tpu.memory_space<vmem>>, vector<6x13x128xbf16>
    %4 = arith.extf %3 : vector<6x13x128xbf16> to vector<6x13x128xf32>
    %5 = vector.extract_strided_slice %4 {offsets = [0, 0, 0], sizes = [6, 1, 128], strides = [1, 1, 1]} : vector<6x13x128xf32> to vector<6x1x128xf32>
    %c0_3 = arith.constant 0 : index
    %c0_4 = arith.constant 0 : index
    %6 = vector.load %arg8[%c0_3, %c0_4] : memref<1x128xf32, #tpu.memory_space<vmem>>, vector<1x128xf32>
    %cst = arith.constant dense<0.000000e+00> : vector<1x128xf32>
    %7 = vector.multi_reduction <add>, %5, %cst [0] : vector<6x1x128xf32> to vector<1x128xf32>
    %8 = arith.addf %6, %7 : vector<1x128xf32>
    %c0_5 = arith.constant 0 : index
    %c0_6 = arith.constant 0 : index
    %9 = vector.load %arg8[%c0_5, %c0_6] : memref<1x128xf32, #tpu.memory_space<vmem>>, vector<1x128xf32>
    tpu.vector_store %arg8[%c0_5, %c0_6], %8 {strides = array<i32>} : memref<1x128xf32, #tpu.memory_space<vmem>>, vector<1x128xf32>,
    %c0_7 = arith.constant 0 : index
    %c0_8 = arith.constant 0 : index
    %10 = vector.load %arg9[%c0_7, %c0_8] : memref<12x128xf32, #tpu.memory_space<vmem>>, vector<12x128xf32>
    %11 = vector.extract_strided_slice %4 {offsets = [0, 1, 0], sizes = [6, 12, 128], strides = [1, 1, 1]} : vector<6x13x128xf32> to vector<6x12x128xf32>
    %12 = vector.broadcast %5 : vector<6x1x128xf32> to vector<6x12x128xf32>
    %13 = arith.mulf %12, %11 : vector<6x12x128xf32>
    %cst_9 = arith.constant dense<0.000000e+00> : vector<12x128xf32>
    %14 = vector.multi_reduction <add>, %13, %cst_9 [0] : vector<6x12x128xf32> to vector<12x128xf32>
    %15 = arith.addf %10, %14 : vector<12x128xf32>
    %c0_10 = arith.constant 0 : index
    %c0_11 = arith.constant 0 : index
    %16 = vector.load %arg9[%c0_10, %c0_11] : memref<12x128xf32, #tpu.memory_space<vmem>>, vector<12x128xf32>
    tpu.vector_store %arg9[%c0_10, %c0_11], %15 {strides = array<i32>} : memref<12x128xf32, #tpu.memory_space<vmem>>, vector<12x128xf32>,
    %c2_i32 = arith.constant 2 : i32
    %17 = arith.cmpi eq, %arg1, %c2_i32 : i32
    %18 = arith.extui %17 : i1 to i32
    %c0_i32_12 = arith.constant 0 : i32
    %19 = arith.cmpi ne, %18, %c0_i32_12 : i32
    scf.if %19 {
      %c0_13 = arith.constant 0 : index
      %20 = memref.load %arg2[%c0_13] : memref<1xf32, #tpu.memory_space<smem>>
      %c0_14 = arith.constant 0 : index
      %c0_15 = arith.constant 0 : index
      %21 = vector.load %arg9[%c0_14, %c0_15] : memref<12x128xf32, #tpu.memory_space<vmem>>, vector<12x128xf32>
      %c0_16 = arith.constant 0 : index
      %c0_17 = arith.constant 0 : index
      %22 = vector.load %arg8[%c0_16, %c0_17] : memref<1x128xf32, #tpu.memory_space<vmem>>, vector<1x128xf32>
      %23 = vector.extract_strided_slice %21 {offsets = [0, 0], sizes = [1, 128], strides = [1, 1]} : vector<12x128xf32> to vector<1x128xf32>
      %24 = vector.extract_strided_slice %21 {offsets = [1, 0], sizes = [1, 128], strides = [1, 1]} : vector<12x128xf32> to vector<1x128xf32>
      %25 = arith.addf %23, %24 : vector<1x128xf32>
      %cst_18 = arith.constant 5.000000e-01 : f32
      %26 = vector.broadcast %cst_18 : f32 to vector<1x128xf32>
      %27 = arith.mulf %26, %25 : vector<1x128xf32>
      %cst_19 = arith.constant 1.000000e-10 : f32
      %28 = vector.broadcast %cst_19 : f32 to vector<1x128xf32>
      %29 = arith.addf %22, %28 : vector<1x128xf32>
      %30 = arith.divf %27, %29 : vector<1x128xf32>
      %31 = vector.extract_strided_slice %21 {offsets = [2, 0], sizes = [10, 128], strides = [1, 1]} : vector<12x128xf32> to vector<10x128xf32>
      %c0_20 = arith.constant 0 : index
      %c0_21 = arith.constant 0 : index
      %32 = vector.load %arg7[%c0_20, %c0_21] : memref<16x128xf32, #tpu.memory_space<vmem>>, vector<10x128xf32>
      tpu.vector_store %arg7[%c0_20, %c0_21], %31 {strides = array<i32>} : memref<16x128xf32, #tpu.memory_space<vmem>>, vector<10x128xf32>,
      %c10 = arith.constant 10 : index
      %c0_22 = arith.constant 0 : index
      %33 = vector.load %arg7[%c10, %c0_22] : memref<16x128xf32, #tpu.memory_space<vmem>>, vector<1x128xf32>
      tpu.vector_store %arg7[%c10, %c0_22], %30 {strides = array<i32>} : memref<16x128xf32, #tpu.memory_space<vmem>>, vector<1x128xf32>,
      %c0_23 = arith.constant 0 : index
      %c0_24 = arith.constant 0 : index
      %34 = vector.load %arg4[%c0_23, %c0_24] : memref<3x128xf32, #tpu.memory_space<vmem>>, vector<3x128xf32>
      %35 = vector.broadcast %20 : f32 to vector<3x128xf32>
      %36 = arith.mulf %34, %35 : vector<3x128xf32>
      %c11 = arith.constant 11 : index
      %c0_25 = arith.constant 0 : index
      %37 = vector.load %arg7[%c11, %c0_25] : memref<16x128xf32, #tpu.memory_space<vmem>>, vector<3x128xf32>
      tpu.vector_store %arg7[%c11, %c0_25], %36 {strides = array<i32>} : memref<16x128xf32, #tpu.memory_space<vmem>>, vector<3x128xf32>,
      %c0_26 = arith.constant 0 : index
      %c0_27 = arith.constant 0 : index
      %38 = vector.load %arg5[%c0_26, %c0_27] : memref<1x128xf32, #tpu.memory_space<vmem>>, vector<1x128xf32>
      %39 = vector.broadcast %20 : f32 to vector<1x128xf32>
      %40 = arith.mulf %38, %39 : vector<1x128xf32>
      %c14 = arith.constant 14 : index
      %c0_28 = arith.constant 0 : index
      %41 = vector.load %arg7[%c14, %c0_28] : memref<16x128xf32, #tpu.memory_space<vmem>>, vector<1x128xf32>
      tpu.vector_store %arg7[%c14, %c0_28], %40 {strides = array<i32>} : memref<16x128xf32, #tpu.memory_space<vmem>>, vector<1x128xf32>,
      %c0_29 = arith.constant 0 : index
      %c0_30 = arith.constant 0 : index
      %42 = vector.load %arg6[%c0_29, %c0_30] : memref<1x128xf32, #tpu.memory_space<vmem>>, vector<1x128xf32>
      %43 = vector.broadcast %20 : f32 to vector<1x128xf32>
      %44 = arith.mulf %42, %43 : vector<1x128xf32>
      %c15 = arith.constant 15 : index
      %c0_31 = arith.constant 0 : index
      %45 = vector.load %arg7[%c15, %c0_31] : memref<16x128xf32, #tpu.memory_space<vmem>>, vector<1x128xf32>
      tpu.vector_store %arg7[%c15, %c0_31], %44 {strides = array<i32>} : memref<16x128xf32, #tpu.memory_space<vmem>>, vector<1x128xf32>,
    } else {
    }
    return
  }
  func.func @transform_0(%arg0: i32, %arg1: i32) -> i32 {
    %c0_i32 = arith.constant 0 : i32
    %c0_i32_0 = arith.constant 0 : i32
    return %c0_i32 : i32
  }
  func.func @transform_1(%arg0: i32, %arg1: i32) -> (i32, i32, i32) {
    %c0_i32 = arith.constant 0 : i32
    %c0_i32_0 = arith.constant 0 : i32
    return %arg1, %c0_i32, %arg0 : i32, i32, i32
  }
  func.func @transform_2(%arg0: i32, %arg1: i32) -> (i32, i32) {
    %c0_i32 = arith.constant 0 : i32
    %c0_i32_0 = arith.constant 0 : i32
    return %c0_i32, %arg0 : i32, i32
  }
  func.func @transform_3(%arg0: i32, %arg1: i32) -> (i32, i32) {
    %c0_i32 = arith.constant 0 : i32
    %c0_i32_0 = arith.constant 0 : i32
    return %c0_i32, %arg0 : i32, i32
  }
  func.func @transform_4(%arg0: i32, %arg1: i32) -> (i32, i32) {
    %c0_i32 = arith.constant 0 : i32
    %c0_i32_0 = arith.constant 0 : i32
    return %c0_i32, %arg0 : i32, i32
  }
  func.func @transform_5(%arg0: i32, %arg1: i32) -> (i32, i32) {
    %c0_i32 = arith.constant 0 : i32
    %c0_i32_0 = arith.constant 0 : i32
    return %c0_i32, %arg0 : i32, i32
  }
}

</mosaic_0001>

<bundles_post_ra>
// kernel: tpu_custom_call.1
= control target key start
LH: loop header
LB: loop body
LE: loop exit
PB: predicated region body
PF: predicated region fallthrough
CT: control target
= control target key end

     0   :  { %s1277_s0 = inlined_call_operand.<no memory space> [shape: f32[1], index: 0, kind: input, shape index: {}]   ;;  %s1278_s1 = inlined_call_operand.hbm [shape: bf16[18,13,256], index: 1, kind: input, shape index: {}]   ;;  %s1279_s2 = inlined_call_operand.hbm [shape: f32[3,256], index: 2, kind: input, shape index: {}]   ;;  %s1280_s3 = inlined_call_operand.vmem [shape: f32[1,256], index: 3, kind: input, shape index: {}]   ;;  %s1281_s4 = inlined_call_operand.vmem [shape: f32[1,256], index: 4, kind: input, shape index: {}]   ;;  %s1282_s5 = inlined_call_operand.hbm [shape: f32[16,256], index: 5, kind: output, shape index: {}]  }
   0x1   :  { %1288 = sst [smem:[#allocation20_spill]] %s1278_s1 }
   0x2   :  { %10 = sst [smem:[#allocation4]] %s1277_s0 }
   0x3   :  { %11 = vsyncpa [#allocation6], 0 }
   0x4   :  { %13 = vsyncpa [#allocation6 + $0x1], 0 }
   0x5   :  { %14 = vsyncpa [#allocation9], 0 }
   0x6   :  { %16 = vsyncpa [#allocation9 + $0x1], 0 }
   0x7   :  { %17 = vsyncpa [#allocation7], 0 }
   0x8   :  { %19 = vsyncpa [#allocation7 + $0x1], 0  ;;  %s980_s20 = smov 0   ;;  %s982_s21 = smov 0  }
   0x9   :  { %s984_s22 = smov 0   ;;  %s986_s23 = smov 0  }
   0xa   :  { %s988_s24 = smov 0   ;;  %s990_s25 = smov 0  }
   0xb   :  { %s992_s26 = smov 0   ;;  %s994_s0 = smov 0  }
   0xc   :  { %s996_s27 = smov 0   ;;  %s998_s28 = smov 0  }
   0xd   :  { %s1000_s29 = smov 0  }
   0xe LB: > { %1289 = sst [smem:[#allocation14_spill]] %s918_s25  ;;  %s34_s30 = sadd.s32 1, %s930_s27  ;;  %s938_s29 = sphi %s1000_s29, %s25_s29   ;;  %s934_s28 = sphi %s998_s28, %s1310_s28   ;;  %s930_s27 = sphi %s996_s27, %s1309_s27   ;;  %s926_s0 = sphi %s994_s0, %s1308_s0   ;;  %s922_s26 = sphi %s992_s26, %s1307_s26   ;;  %s918_s25 = sphi %s990_s25, %s1306_s25   ;;  %s914_s24 = sphi %s988_s24, %s1315_s24   ;;  %s910_s23 = sphi %s986_s23, %s1314_s23   ;;  %s906_s22 = sphi %s984_s22, %s1313_s22   ;;  %s902_s21 = sphi %s982_s21, %s1312_s21   ;;  %s898_s20 = sphi %s980_s20, %s1311_s20  }
   0xf   : > { %1290 = sst [smem:[#allocation15_spill]] %s930_s27  ;;  %p1037_p0 = scmp.ge.s32.totalorder %s34_s30, 3 }
  0x10   : > { %1291 = sst [smem:[#allocation16_spill]] %s934_s28  ;;  %p74_p1 = scmp.ne.s32.totalorder %s918_s25, %s914_s24 }
  0x11   : > { %p75_p2 = scmp.eq.s32.totalorder %s938_s29, 0  ;;  %s1317_s30 = smov (%p1037_p0, %s34_s30), 0 }
  0x12   : > { %1293 = sst [smem:[#allocation17_spill]] %s1317_s30  ;;  %p653_p4 = scmp.lt.s32.totalorder %s938_s29, 6 }
  0x13   : > { %p76_p3 = por %p75_p2, %p74_p1  ;;  %s62_s8 = ssub.s32 %s930_s27, %s1317_s30 }
  0x14   : > { %s211_s9 = sand.u32 1, %s918_s25   ;;  %s633_s11 = smul.u32 24, %s930_s27 }
  0x15   : > { %s634_s10 = smul.u32 48, %s211_s9  ;;  %p643_p5 = pnand %p653_p4, %p76_p3 }
  0x16   : > { %s220_s12 = sadd.s32 %s934_s28, %s633_s11  ;;  %s1294_s1 = sld [smem:[#allocation20_spill]] }
  0x17   : > { %s215_s13 = scalar_lea.vmem [#allocation5], %s634_s10  ;;  %s621_s15 = sshll.u32 %s220_s12, 2 }
  0x18   : > { %s225_s14 = sshll.u32 %s215_s13, 4  ;;  %s212_s6 = scalar_lea.sflag [#allocation6], %s211_s9  ;;  %s226_s14 = int_to_ptr.vmem [resolvable:$true] %s225_s14 }
  0x19   : > { %s940_s11 = smov 128   ;;  %s941_s10 = smov 64  }
  0x1a   : > { %s942_s13 = smov 4   ;;  %p624_p6 = scmp.ge.s32.totalorder %s938_s29, 1 }
  0x1b   : > { %p264_p7 = scmp.lt.s32.totalorder %s938_s29, 7  ;;  %s617_s9 = sadd.s32 4294967294, %s938_s29  }
  0x1c   : > { %s222_s18 = scalar_lea.hbm %s1294_s1, %s621_s15  ;;  %s616_s15 = sadd.s32 4294967295, %s938_s29  }
  0x1d   : > { %s223_s19 = sshll.u32 %s222_s18, 4  ;;  %p1063_p8 = pnand %p624_p6, %p264_p7  ;;  %s224_s19 = int_to_ptr.hbm [resolvable:$true] %s223_s19 }
  0x1e   : > { %645 = dma.hbm_to_vmem [thread:$0]  (!%p643_p5), %s224_s19, 768, %s226_s14, %s212_s6, %s940_s11, %s941_s10, %s942_s13  }
  0x1f   : > { %s37_s16 = sadd.s32 1, %s934_s28  ;;  %p80_p9 = scmp.ne.s32.totalorder %s914_s24, %s910_s23 }
  0x20   : > { %s1319_s16 = smov (!%p1037_p0, %s37_s16), %s934_s28  ;;  %p1075_p10 = scmp.eq.s32.totalorder %s616_s15, 0 }
  0x21   : > { %p39_p11 = scmp.ge.s32.totalorder %s1319_s16, 2  ;;  %s93_s14 = sadd.s32 1, %s906_s22 }
  0x22   : > { %p1082_p12 = por %p1075_p10, %p80_p9  ;;  %p100_p13 = scmp.ne.s32.totalorder %s906_s22, %s902_s21 }
  0x23   : > { %s1321_s16 = smov (%p39_p11, %s1319_s16), 0  ;;  %p106_p1 = scmp.ne.s32.totalorder %s902_s21, %s898_s20 }
  0x24   : > { %1298 = sst [smem:[#allocation18_spill]] %s1321_s16  ;;  %p1092_p0 = por %p100_p13, %p75_p2 }
  0x25   : > { %s63_s7 = ssub.s32 %s934_s28, %s1321_s16  ;;  %p182_p3 = scmp.eq.s32.totalorder %s616_s15, 5 }
  0x26   : > { %s64_s18 = sor.u32 %s63_s7, %s62_s8  ;;  %p91_p5 = scmp.eq.s32.totalorder %s63_s7, 0 }
  0x27   : > { %p65_p6 = scmp.eq.s32.totalorder %s64_s18, 0  ;;  %p1108_p7 = por %p106_p1, %p1075_p10 }
  0x28   : > { %s1113_s11 = scalar_select %p91_p5, %s906_s22, %s93_s14  }
  0x29   : > { %s1301_s10 = sadd.s32 1, %s918_s25  ;;  %p1120_p2 = por %p182_p3, %p100_p13 }
  0x2a   : > { %s1118_s13 = scalar_select %p65_p6, %s918_s25, %s1301_s10  }
  0x2b   : > { %p188_p9 = scmp.eq.s32.totalorder %s617_s9, 5  ;;  %s235_s8 = sand.u32 1, %s906_s22  }
  0x2c   : > { %1302 = sst [smem:[#allocation19_spill]] %s1118_s13  ;;  %s623_s15 = sshll.u32 %s934_s28, 2 }
  0x2d   : > { %p1129_p11 = por %p188_p9, %p106_p1  ;;  %s622_s7 = sshll.u32 %s235_s8, 2 }
  0x2e   : > { %s243_s14 = scalar_lea.hbm %s1279_s2, %s623_s15  ;;  %s239_s10 = scalar_lea.vmem [#allocation8], %s622_s7 }
  0x2f   : > { %s245_s30 = sshll.u32 %s243_s14, 4  ;;  %s247_s27 = sshll.u32 %s239_s10, 4  ;;  %s246_s30 = int_to_ptr.hbm [resolvable:$true] %s245_s30  ;;  %s248_s27 = int_to_ptr.vmem [resolvable:$true] %s247_s27 }
  0x30   : > { %p646_p10 = pnand %p653_p4, %p1092_p0  ;;  %s236_s9 = scalar_lea.sflag [#allocation9], %s235_s8 }
  0x31   : > { %268 = sbr.rel (%p1063_p8) target bundleno = 142 (0x8e), region = 40  ;;  %s270_s28 = sand.u32 (!%p1063_p8), 1, %s914_s24  }
  0x32   : > { %648 = dma.hbm_to_vmem [thread:$0]  (!%p646_p10), %s246_s30, 64, %s248_s27, %s236_s9  }
  0x33   : > { %s635_s13 = smul.u32 (!%p1063_p8), 48, %s270_s28  ;;  %s271_s25 = scalar_lea.sflag (!%p1063_p8), [#allocation6], %s270_s28 }
  0x35   : > { %s1143_s16 = scalar_lea.vmem (!%p1063_p8), [#allocation5], %s635_s13 }
  0x36   : > { %885 = dma.done.wait (%p1082_p12), %s271_s25, 768  }
  0x37   : > { %887 = vsyncadd (%p1082_p12), %s271_s25, 4294966528  ;;  %s1150_s23 = sand.u32 1, %s902_s21  }
  0x38   : > { %s625_s27 = sshll.u32 %s1150_s23, 2  ;;  %s281_s30 = scalar_lea.sflag [#allocation9], %s1150_s23 }
  0x39   : > { %s1154_s12 = scalar_lea.vmem [#allocation8], %s625_s27 }
  0x3a   : > { %889 = dma.done.wait (%p1108_p7), %s281_s30, 64  }
  0x3b   : > { %891 = vsyncadd (%p1108_p7), %s281_s30, 4294967232  ;;  %s626_s28 = sshll.u32 %s1150_s23, 4  ;;  %p324_p4 = scmp.lt.s32.totalorder %s926_s0, 1 }
  0x3c   : > { %s1173_s14 = scalar_lea.vmem [#allocation10], %s626_s28  ;;  %p627_p8 = scmp.ne.s32.totalorder %s922_s26, 0 }
  0x3d   : > { %s1163_s25 = scalar_select %p324_p4, %s926_s0, 1 }
  0x3e   : > { %333 = sbr.rel (%p627_p8) target bundleno = 71 (0x47), region = 52 }
  0x3f   : > { %s326_s8 = scalar_lea.vmem %s1280_s3, %s1163_s25  ;;  %s329_s18 = scalar_lea.vmem %s1281_s4, %s1163_s25 }
  0x43   : > { %v943_v0 = vmov 0.0  }
  0x44   : > { %334 = vst [vmem:[#allocation2] sm:$0x1] %v943_v0 }
  0x45   : > { %335 = vst [vmem:[#allocation3] sm:$0xff] %v943_v0 }
  0x46   : > { %336 = vst [vmem:[#allocation3 + $0x8] sm:$0xf] %v943_v0 }
  0x47 PF: > { %v337_v1 = vld [vmem:[%s1143_s16] sm:$0xf]  ;;  %v339_v2 = vld [vmem:[%s1143_s16 + $0x8] sm:$0xf]  ;;  %v341_v3 = vld [vmem:[%s1143_s16 + $0x10] sm:$0xf] }
  0x48   : > { %v343_v4 = vld [vmem:[%s1143_s16 + $0x18] sm:$0xf]  ;;  %v345_v5 = vld [vmem:[%s1143_s16 + $0x20] sm:$0xf]  ;;  %v349_v6 = vunpack.c.l.bf16 %v337_v1  ;;  %v351_v7 = vunpack.c.l.bf16 %v339_v2  ;;  %v353_v8 = vunpack.c.l.bf16 %v341_v3  ;;  %v347_v9 = vld [vmem:[%s1143_s16 + $0x28] sm:$0xf] }
  0x49   : > { %vm362_vm0 = vcmask 1040384   ;;  %v338_v10 = vld [vmem:[%s1143_s16 + $0x4] sm:$0x7]  ;;  %v355_v11 = vunpack.c.l.bf16 %v343_v4  ;;  %v340_v15 = vld [vmem:[%s1143_s16 + $0xc] sm:$0x7]  ;;  %v357_v16 = vunpack.c.l.bf16 %v345_v5  ;;  %v359_v19 = vunpack.c.l.bf16 %v347_v9  ;;  %p628_p12 = scmp.ne.s32.totalorder %s922_s26, 2 }
  0x4a   : > { %v363_v12 = vsel %vm362_vm0, %v349_v6, 0.0  ;;  %v364_v13 = vsel %vm362_vm0, %v351_v7, 0.0  ;;  %v366_v14 = vsel %vm362_vm0, %v353_v8, 0.0  ;;  %v342_v18 = vld [vmem:[%s1143_s16 + $0x14] sm:$0x7]  ;;  %v350_v22 = vunpack.c.l.bf16 %v338_v10  ;;  %s436_s19 = sld [smem:[#allocation4]] (!%p628_p12) }
  0x4b   : > { %v365_v17 = vadd.f32 %v364_v13, %v363_v12  ;;  %v368_v20 = vsel %vm362_vm0, %v355_v11, 0.0  ;;  %v344_v21 = vld [vmem:[%s1143_s16 + $0x1c] sm:$0x7]  ;;  %v370_v24 = vsel %vm362_vm0, %v357_v16, 0.0  ;;  %v346_v25 = vld [vmem:[%s1143_s16 + $0x24] sm:$0x7]  ;;  %v352_v26 = vunpack.c.l.bf16 %v340_v15 }
  0x4c   : > { %v354_v27 = vunpack.c.l.bf16 %v342_v18  ;;  %v378_v28 = vperm.slane %v349_v6, 0  ;;  %v379_v29 = vperm.slane %v351_v7, 0  ;;  %v380_v30 = vperm.slane %v353_v8, 0  ;;  %v348_v34 = vld [vmem:[%s1143_s16 + $0x2c] sm:$0x7] }
  0x4d   : > { %v367_v23 = vadd.f32 %v366_v14, %v365_v17  ;;  %v381_v31 = vperm.slane %v355_v11, 0  ;;  %v372_v33 = vsel %vm362_vm0, %v359_v19, 0.0  ;;  %v356_v35 = vunpack.c.l.bf16 %v344_v21  ;;  %v361_v44 = vld [vmem:[#allocation2] sm:$0x1]  ;;  %v377_v15 = vld [vmem:[#allocation3 + $0x8] sm:$0xf] }
  0x4e   : > { %v382_v36 = vperm.slane %v357_v16, 0  ;;  %v358_v37 = vunpack.c.l.bf16 %v346_v25  ;;  %v384_v38 = vmul.f32 %v378_v28, %v349_v6  ;;  %v386_v39 = vmul.f32 %v379_v29, %v351_v7 }
  0x4f   : > { %v369_v32 = vadd.f32 %v368_v20, %v367_v23  ;;  %vm396_vm1 = vcmask 1047553   ;;  %v383_v41 = vperm.slane %v359_v19, 0  ;;  %v388_v42 = vmul.f32 %v380_v30, %v353_v8 }
  0x50   : > { %v390_v43 = vmul.f32 %v381_v31, %v355_v11  ;;  %v360_v45 = vunpack.c.l.bf16 %v348_v34  ;;  %v385_v46 = vmul.f32 %v378_v28, %v350_v22  ;;  %v387_v47 = vmul.f32 %v379_v29, %v352_v26 }
  0x51   : > { %v371_v40 = vadd.f32 %v370_v24, %v369_v32  ;;  %v389_v48 = vmul.f32 %v380_v30, %v354_v27  ;;  %v392_v50 = vmul.f32 %v382_v36, %v357_v16  ;;  %v397_v51 = vsel %vm396_vm1, %v384_v38, 0.0  ;;  %v376_v16 = vld [vmem:[#allocation3] sm:$0xff] }
  0x52   : > { %v398_v52 = vsel %vm396_vm1, %v386_v39, 0.0  ;;  %v391_v53 = vmul.f32 %v381_v31, %v356_v35  ;;  %v393_v54 = vmul.f32 %v382_v36, %v358_v37  ;;  %v400_v56 = vsel %vm396_vm1, %v388_v42, 0.0 }
  0x53   : > { %v373_v49 = vadd.f32 %v372_v33, %v371_v40  ;;  %v399_v55 = vadd.f32 %v398_v52, %v397_v51  ;;  %v394_v58 = vmul.f32 %v383_v41, %v359_v19  ;;  %v402_v59 = vsel %vm396_vm1, %v390_v43, 0.0 }
  0x54   : > { %vm408_vm2 = vcmask 1044480   ;;  %v404_v0 = vsel %vm396_vm1, %v392_v50, 0.0  ;;  %v395_v2 = vmul.f32 %v383_v41, %v360_v45  ;;  %vm422_vm3 = vcmask 1046528  }
  0x55   : > { %v374_v57 = vadd.f32 %v373_v49, %v361_v44  ;;  %v401_v60 = vadd.f32 %v400_v56, %v399_v55  ;;  %v409_v61 = vsel %vm408_vm2, %v385_v46, 0.0  ;;  %v410_v62 = vsel %vm408_vm2, %v387_v47, 0.0 }
  0x56   : > { %v412_v63 = vsel %vm408_vm2, %v389_v48, 0.0  ;;  %v411_v1 = vadd.f32 %v410_v62, %v409_v61  ;;  %v414_v4 = vsel %vm408_vm2, %v391_v53, 0.0  ;;  %v406_v5 = vsel %vm396_vm1, %v394_v58, 0.0 }
  0x57   : > { %375 = vst [vmem:[#allocation2] sm:$0x1] %v374_v57  ;;  %v403_v3 = vadd.f32 %v402_v59, %v401_v60  ;;  %v416_v8 = vsel %vm408_vm2, %v393_v54, 0.0  ;;  %v418_v11 = vsel %vm408_vm2, %v395_v2, 0.0 }
  0x58   : > { %v413_v6 = vadd.f32 %v412_v63, %v411_v1 }
  0x59   : > { %v405_v7 = vadd.f32 %v404_v0, %v403_v3 }
  0x5a   : > { %v415_v9 = vadd.f32 %v414_v4, %v413_v6 }
  0x5b   : > { %v407_v10 = vadd.f32 %v406_v5, %v405_v7 }
  0x5c   : > { %v417_v12 = vadd.f32 %v416_v8, %v415_v9 }
  0x5d   : > { %v423_v14 = vrot.slane %v407_v10, 1 }
  0x5e   : > { %v419_v13 = vadd.f32 %v418_v11, %v417_v12 }
  0x60   : > { %v424_v17 = vrot.slane %v419_v13, 1 }
  0x61   : > { %435 = sbr.rel (%p628_p12) target bundleno = 125 (0x7d), region = 56 }
  0x62   : > { %v425_v18 = vsel %vm422_vm3, %v423_v14, %v424_v17  ;;  %v429_v19 = vadd.f32 %v424_v17, %v377_v15 }
  0x63   : > { %v428_v20 = vadd.f32 %v425_v18, %v376_v16 }
  0x64   : > { %431 = vst [vmem:[#allocation3 + $0x8] sm:$0xf] %v429_v19 }
  0x65   : > { %430 = vst [vmem:[#allocation3] sm:$0xff] %v428_v20 }
  0x66   : > { %v439_v23 = vld [vmem:[#allocation2] sm:$0x1]  ;;  %v464_v25 = vld [vmem:[%s1154_s12] sm:$0x7]  ;;  %v465_v29 = vstv %s436_s19 }
  0x67   : > { %v445_v24 = vadd.f32 1e-10, %v439_v23  ;;  %v468_v26 = vld [vmem:[%s326_s8] sm:$0x1]  ;;  %v466_v31 = vmul.f32 %v465_v29, %v464_v25 }
  0x68   : > { %v471_v27 = vld [vmem:[%s329_s18] sm:$0x1]  ;;  %v469_v32 = vmul.f32 %v468_v26, %v465_v29 }
  0x69   : > { %750 = vrcp.f32 %v445_v24  ;;  %v472_v33 = vmul.f32 %v471_v27, %v465_v29  ;;  %v457_v36 = vand.u32 2147483648, %v445_v24  ;;  %467 = vst [vmem:[%s1173_s14 + $0xb] sm:$0x7] %v466_v31  ;;  %vm451_vm4 = vweird.f32 %v445_v24 }
  0x6a   : > { %v455_v38 = vand.u32 2147483647, %v445_v24  ;;  %470 = vst [vmem:[%s1173_s14 + $0xe] sm:$0x1] %v469_v32 }
  0x6b   : > { %v438_v22 = vld [vmem:[#allocation3 + $0x8] sm:$0xf]  ;;  %473 = vst [vmem:[%s1173_s14 + $0xf] sm:$0x1] %v472_v33  ;;  %v458_v40 = vor.u32 1.1754944e-38, %v457_v36 }
  0x6c   : > { %v437_v21 = vld [vmem:[#allocation3] sm:$0xff]  ;;  %462 = vst [vmem:[%s1173_s14 + $0x6] sm:$0xf] %v438_v22  ;;  %vm456_vm7 = vcmp.eq.f32.partialorder %v455_v38, 8.507059e+37 }
  0x6d   : > { %461 = vst [vmem:[%s1173_s14 - $0x2] sm:$0xfc] %v437_v21  ;;  %v441_v28 = vrot.slane %v437_v21, 1 }
  0x6f   : > { %v751_v30 = vpop.eup %750  ;;  %v443_v35 = vadd.f32 %v441_v28, %v437_v21 }
  0x70   : > { %v447_v34 = vmul.f32 %v751_v30, %v445_v24  ;;  %vm452_vm5 = vweird.f32 %v751_v30 }
  0x71   : > { %vm453_vm6 = vmor %vm451_vm4, %vm452_vm5  ;;  %v444_v41 = vmul.f32 0.5, %v443_v35 }
  0x72   : > { %v448_v37 = vsub.f32 1.0, %v447_v34 }
  0x74   : > { %v449_v39 = vmul.f32 %v751_v30, %v448_v37 }
  0x76   : > { %v450_v42 = vadd.f32 %v751_v30, %v449_v39 }
  0x78   : > { %v454_v43 = vsel %vm453_vm6, %v751_v30, %v450_v42 }
  0x79   : > { %v459_v44 = vsel %vm456_vm7, %v458_v40, %v454_v43 }
  0x7a   : > { %v460_v45 = vmul.f32 %v459_v44, %v444_v41 }
  0x7c   : > { %463 = vst [vmem:[%s1173_s14 + $0xa] sm:$0x1] %v460_v45 }
  0x7d PF: > { %s630_s27 = sshll.u32 %s926_s0, 3  ;;  %s486_s25 = sshll.u32 %s1173_s14, 4  ;;  %s487_s25 = int_to_ptr.vmem [resolvable:$true] %s486_s25 }
  0x7e   : > { %s485_s28 = scalar_lea.hbm %s1282_s5, %s630_s27  ;;  %s475_s13 = scalar_lea.sflag [#allocation7], %s1150_s23 }
  0x7f   : > { %s488_s17 = sshll.u32 %s485_s28, 4  ;;  %s832_s0 = scalar_lea.hbm %s1282_s5, 32  ;;  %s489_s17 = int_to_ptr.hbm [resolvable:$true] %s488_s17 }
  0x80   : > { %s826_s8 = sshra.s32 %s489_s17, 4  ;;  %s827_s8 = int_to_ptr.hbm [resolvable:$true] %s826_s8 }
  0x81   : > { %s828_s15 = scalar_lea.hbm %s827_s8, 16  ;;  %p833_p3 = scmp.lt.s32.totalorder %s827_s8, %s1282_s5 }
  0x82   : > { %p829_p13 = scmp.ne.s32.totalorder %s827_s8, %s828_s15  ;;  %p834_p5 = scmp.lt.s32.totalorder %s832_s0, %s828_s15 }
  0x84   : > { %p830_p0 = pnand %p829_p13, %p1120_p2  ;;  %p835_p6 = por %p834_p5, %p833_p3 }
  0x86   : > { %p831_p1 = pneg %p830_p0 }
  0x88   : > { %p836_p7 = pnand %p835_p6, %p831_p1 }
  0x8a   : > { %839 = shalt.err (!%p836_p7)
}
  0x8b   : > { %s944_s23 = smov 128   ;;  %s945_s14 = smov 256  }
  0x8c   : > { %s946_s9 = smov 8  }
  0x8d   : > { %640 = dma.vmem_to_hbm [thread:$0]  (%p1120_p2), %s487_s25, 256, %s489_s17, %s475_s13, %s944_s23, %s945_s14, %s946_s9  }
  0x8e PF: > { %p654_p9 = scmp.ge.s32.totalorder %s938_s29, 2  ;;  %s503_s26 = sand.u32 1, %s898_s20  }
  0x8f   : > { %s504_s16 = scalar_lea.sflag [#allocation7], %s503_s26 }
  0x90   : > { %p650_p10 = pnand %p654_p9, %p1129_p11 }
  0x92   : > { %p651_p4 = pneg %p650_p10 }
  0x94   : > { %893 = dma.done.wait (%p651_p4), %s504_s16, 256  }
  0x95   : > { %895 = vsyncadd (%p651_p4), %s504_s16, 4294967040  ;;  %s25_s29 = sadd.s32 1, %s938_s29   ;;  %s1305_s1 = sld [smem:[#allocation14_spill]] }
  0x96   : > { %p22_p8 = scmp.ge.s32.totalorder %s25_s29, 8   ;;  %s1306_s25 = sld [smem:[#allocation19_spill]] }
  0x97   : > { %s1307_s26 = sld [smem:[#allocation15_spill]]  ;;  %s1311_s20 = smov %s902_s21 }
  0x98   : > { %s1308_s0 = sld [smem:[#allocation16_spill]]  ;;  %s1312_s21 = smov %s906_s22 }
  0x99   : > { %s1309_s27 = sld [smem:[#allocation17_spill]]  ;;  %s1313_s22 = smov %s1113_s11 }
  0x9a   : > { %s1310_s28 = sld [smem:[#allocation18_spill]]  ;;  %s1314_s23 = smov %s914_s24 }
  0x9b   : > { %s1315_s24 = smov %s1305_s1  ;;  %24 = sbr.rel (!%p22_p8) target bundleno = 14 (0xe), region = 112 }
  0xa0   :  { %510 = vsyncpa [#allocation6], 1 }
  0xa1   :  { %512 = vsyncpa [#allocation6 + $0x1], 1 }
  0xa2   :  { %513 = vsyncpa [#allocation9], 1 }
  0xa3   :  { %515 = vsyncpa [#allocation9 + $0x1], 1 }
  0xa4   :  { %516 = vsyncpa [#allocation7], 1 }
  0xa5   :  { %518 = vsyncpa [#allocation7 + $0x1], 1 }

</bundles_post_ra>
